<compile_context>
chip_gen: v7x
topology: tpu7x:2x2x1
jax: 0.10.0
libtpu: 0.0.40
codegen_flags: <defaults>
</compile_context>

<pallas_src>
import math

import jax
import jax.numpy as jnp
from jax.experimental import pallas as pl
from jax.experimental.pallas import tpu as pltpu


def sine_encoding_kernel(e_ref, div_ref, wst_ref, wct_ref, we_ref, b_ref, o_ref):
    # e_ref:   (1, TN)       f32   eigenvalues for this tile (lane-dense)
    # div_ref: (H/2, 1)      f32   100 * exp(arange(0,H,2) * (-ln(1e4)/H))
    # wst_ref: (H, H/2)      f32   W[:, 1:1+H/2]        (sin part of Linear)
    # wct_ref: (H, H/2)      f32   W[:, 1+H/2:]         (cos part of Linear)
    # we_ref:  (H, 1)        f32   W[:, 0:1]            (raw-e column)
    # b_ref:   (H, 1)        f32   bias as a column
    # o_ref:   (H, TN)       f32   transposed output tile (lane-dense store)
    e = e_ref[...]                                   # (1, TN)
    pe = div_ref[...] * e                            # (H/2, TN) broadcast (x100 folded)
    s = jnp.sin(pe)                                  # EUP
    c = jnp.cos(pe)                                  # EUP

    o_ref[...] = (
        jnp.dot(wst_ref[...], s, preferred_element_type=jnp.float32)
        + jnp.dot(wct_ref[...], c, preferred_element_type=jnp.float32)
        + we_ref[...] * e                            # VPU broadcast, not MXU
        + b_ref[...]
    )


def _round_up(x, m):
    return ((x + m - 1) // m) * m


def sine_encoding(e, weight, bias, hidden_dim, *, tile_n=2048):
    """e: [N] f32; weight: [H, H+1]; bias: [H] -> returns [N, H]."""
    assert hidden_dim % 2 == 0, "SineEncoding requires an even hidden_dim"
    n = e.shape[0]
    half = hidden_dim // 2

    # Constants of hidden_dim only; computed once in plain JAX (glue).
    div100 = (
        100.0
        * jnp.exp(
            jnp.arange(0, hidden_dim, 2, dtype=jnp.float32)
            * (-math.log(10000.0) / hidden_dim)
        )
    ).reshape(half, 1)

    w = weight.astype(jnp.float32)                   # (H, H+1)
    we_col = w[:, 0:1]                               # (H, 1)
    ws_t = w[:, 1:1 + half]                          # (H, H/2)
    wc_t = w[:, 1 + half:]                           # (H, H/2)
    b_col = bias.reshape(hidden_dim, 1).astype(jnp.float32)

    # Tile N along the lane axis; pad to a multiple of the tile (>=128 lanes).
    tn = _round_up(min(tile_n, _round_up(n, 128)), 128)
    n_pad = _round_up(n, tn)
    e_row = jnp.pad(e.astype(jnp.float32), (0, n_pad - n)).reshape(1, n_pad)

    grid = (n_pad // tn,)

    out_t = pl.pallas_call(
        sine_encoding_kernel,
        out_shape=jax.ShapeDtypeStruct((hidden_dim, n_pad), jnp.float32),
        grid=grid,
        in_specs=[
            pl.BlockSpec((1, tn), lambda i: (0, i)),              # e (tiled on N)
            pl.BlockSpec((half, 1), lambda i: (0, 0)),            # div100
            pl.BlockSpec((hidden_dim, half), lambda i: (0, 0)),   # Ws^T
            pl.BlockSpec((hidden_dim, half), lambda i: (0, 0)),   # Wc^T
            pl.BlockSpec((hidden_dim, 1), lambda i: (0, 0)),      # w_e column
            pl.BlockSpec((hidden_dim, 1), lambda i: (0, 0)),      # bias column
        ],
        out_specs=pl.BlockSpec((hidden_dim, tn), lambda i: (0, i)),
        compiler_params=pltpu.CompilerParams(
            dimension_semantics=("parallel",),
        ),
    )(e_row, div100, ws_t, wc_t, we_col, b_col)

    # Back to the PyTorch (N, H) layout; drop padding.
    return out_t[:, :n].T


def reference(e, weight, bias, hidden_dim):
    div = jnp.exp(
        jnp.arange(0, hidden_dim, 2, dtype=jnp.float32)
        * (-math.log(10000.0) / hidden_dim)
    )
    ee = e * 100.0
    pe = ee[:, None] * div[None, :]
    eeig = jnp.concatenate([e[:, None], jnp.sin(pe), jnp.cos(pe)], axis=1)
    return eeig @ weight.T + bias


if __name__ == "__main__":
    hidden_dim = 32
    n = 8  # number of eigenvalues

    key = jax.random.PRNGKey(0)
    k_e, k_w, k_b = jax.random.split(key, 3)

    # Deterministic synthetic parameters (xavier-uniform-ish for the Linear).
    fan_in, fan_out = hidden_dim + 1, hidden_dim
    limit = math.sqrt(6.0 / (fan_in + fan_out))
    weight = jax.random.uniform(
        k_w, (fan_out, fan_in), minval=-limit, maxval=limit, dtype=jnp.float32)
    bias = jax.random.uniform(
        k_b, (fan_out,), minval=-0.01, maxval=0.01, dtype=jnp.float32)

    # Eigenvalue-like inputs in [0, 2].
    e = jax.random.uniform(k_e, (n,), minval=0.0, maxval=2.0, dtype=jnp.float32)

    out = jax.block_until_ready(sine_encoding(e, weight, bias, hidden_dim))
    ref = reference(e, weight, bias, hidden_dim)
    assert out.shape == (n, hidden_dim)
    assert jnp.allclose(out, ref, atol=1e-4, rtol=1e-4)

    # Second check: exercise the multi-tile grid + padding path.
    n2 = 1000
    e2 = jax.random.uniform(
        jax.random.PRNGKey(1), (n2,), minval=0.0, maxval=2.0, dtype=jnp.float32)
    out2 = jax.block_until_ready(
        sine_encoding(e2, weight, bias, hidden_dim, tile_n=256))
    ref2 = reference(e2, weight, bias, hidden_dim)
    assert out2.shape == (n2, hidden_dim)
    assert jnp.allclose(out2, ref2, atol=1e-4, rtol=1e-4)

    print("KERNEL_OK")
</pallas_src>

<mosaic_0001>
module attributes {stable_mosaic.version = 11 : i64} {
  func.func @sine_encoding_kernel(%arg0: i32, %arg1: memref<1x128xf32, #tpu.memory_space<vmem>>, %arg2: memref<16x1xf32, #tpu.memory_space<vmem>>, %arg3: memref<32x16xf32, #tpu.memory_space<vmem>>, %arg4: memref<32x16xf32, #tpu.memory_space<vmem>>, %arg5: memref<32x1xf32, #tpu.memory_space<vmem>>, %arg6: memref<32x1xf32, #tpu.memory_space<vmem>>, %arg7: memref<32x128xf32, #tpu.memory_space<vmem>>) attributes {dimension_semantics = [#tpu.dimension_semantics<parallel>], iteration_bounds = array<i64: 1>, scalar_prefetch = 0 : i64, scratch_operands = 0 : i64, tpu.core_type = #tpu.core_type<tc>, window_params = [{transform_indices = @transform_0, window_bounds = array<i64: 1, 128>}, {pipeline_mode = #tpu.pipeline_mode<synchronous>, transform_indices = @transform_1, window_bounds = array<i64: 16, 1>}, {pipeline_mode = #tpu.pipeline_mode<synchronous>, transform_indices = @transform_2, window_bounds = array<i64: 32, 16>}, {pipeline_mode = #tpu.pipeline_mode<synchronous>, transform_indices = @transform_3, window_bounds = array<i64: 32, 16>}, {pipeline_mode = #tpu.pipeline_mode<synchronous>, transform_indices = @transform_4, window_bounds = array<i64: 32, 1>}, {pipeline_mode = #tpu.pipeline_mode<synchronous>, transform_indices = @transform_5, window_bounds = array<i64: 32, 1>}, {transform_indices = @transform_6, window_bounds = array<i64: 32, 128>}]} {
    %c0 = arith.constant 0 : index
    %c0_0 = arith.constant 0 : index
    %0 = vector.load %arg1[%c0, %c0_0] : memref<1x128xf32, #tpu.memory_space<vmem>>, vector<1x128xf32>
    %c0_1 = arith.constant 0 : index
    %c0_2 = arith.constant 0 : index
    %1 = vector.load %arg2[%c0_1, %c0_2] : memref<16x1xf32, #tpu.memory_space<vmem>>, vector<16x1xf32>
    %2 = vector.broadcast %1 : vector<16x1xf32> to vector<16x128xf32>
    %3 = vector.broadcast %0 : vector<1x128xf32> to vector<16x128xf32>
    %4 = arith.mulf %2, %3 : vector<16x128xf32>
    %5 = math.sin %4 : vector<16x128xf32>
    %6 = math.cos %4 : vector<16x128xf32>
    %c0_3 = arith.constant 0 : index
    %c0_4 = arith.constant 0 : index
    %7 = vector.load %arg3[%c0_3, %c0_4] : memref<32x16xf32, #tpu.memory_space<vmem>>, vector<32x16xf32>
    %cst = arith.constant dense<0.000000e+00> : vector<32x128xf32>
    %8 = tpu.matmul %7, %5, %cst {dimension_numbers = #tpu.dot_dimension_numbers<[1], [0], [0], [1], [0, 0, 1, 1], [], []>} : vector<32x16xf32>, vector<16x128xf32>, vector<32x128xf32> -> vector<32x128xf32>
    %c0_5 = arith.constant 0 : index
    %c0_6 = arith.constant 0 : index
    %9 = vector.load %arg4[%c0_5, %c0_6] : memref<32x16xf32, #tpu.memory_space<vmem>>, vector<32x16xf32>
    %cst_7 = arith.constant dense<0.000000e+00> : vector<32x128xf32>
    %10 = tpu.matmul %9, %6, %cst_7 {dimension_numbers = #tpu.dot_dimension_numbers<[1], [0], [0], [1], [0, 0, 1, 1], [], []>} : vector<32x16xf32>, vector<16x128xf32>, vector<32x128xf32> -> vector<32x128xf32>
    %11 = arith.addf %8, %10 : vector<32x128xf32>
    %c0_8 = arith.constant 0 : index
    %c0_9 = arith.constant 0 : index
    %12 = vector.load %arg5[%c0_8, %c0_9] : memref<32x1xf32, #tpu.memory_space<vmem>>, vector<32x1xf32>
    %13 = vector.broadcast %12 : vector<32x1xf32> to vector<32x128xf32>
    %14 = vector.broadcast %0 : vector<1x128xf32> to vector<32x128xf32>
    %15 = arith.mulf %13, %14 : vector<32x128xf32>
    %16 = arith.addf %11, %15 : vector<32x128xf32>
    %c0_10 = arith.constant 0 : index
    %c0_11 = arith.constant 0 : index
    %17 = vector.load %arg6[%c0_10, %c0_11] : memref<32x1xf32, #tpu.memory_space<vmem>>, vector<32x1xf32>
    %18 = vector.broadcast %17 : vector<32x1xf32> to vector<32x128xf32>
    %19 = arith.addf %16, %18 : vector<32x128xf32>
    %c0_12 = arith.constant 0 : index
    %c0_13 = arith.constant 0 : index
    %20 = vector.load %arg7[%c0_12, %c0_13] : memref<32x128xf32, #tpu.memory_space<vmem>>, vector<32x128xf32>
    tpu.vector_store %arg7[%c0_12, %c0_13], %19 {strides = array<i32>} : memref<32x128xf32, #tpu.memory_space<vmem>>, vector<32x128xf32>,
    return
  }
  func.func @transform_0(%arg0: i32) -> (i32, i32) {
    %c0_i32 = arith.constant 0 : i32
    %c0_i32_0 = arith.constant 0 : i32
    return %c0_i32, %arg0 : i32, i32
  }
  func.func @transform_1(%arg0: i32) -> (i32, i32) {
    %c0_i32 = arith.constant 0 : i32
    %c0_i32_0 = arith.constant 0 : i32
    %c0_i32_1 = arith.constant 0 : i32
    return %c0_i32, %c0_i32_0 : i32, i32
  }
  func.func @transform_2(%arg0: i32) -> (i32, i32) {
    %c0_i32 = arith.constant 0 : i32
    %c0_i32_0 = arith.constant 0 : i32
    %c0_i32_1 = arith.constant 0 : i32
    return %c0_i32, %c0_i32_0 : i32, i32
  }
  func.func @transform_3(%arg0: i32) -> (i32, i32) {
    %c0_i32 = arith.constant 0 : i32
    %c0_i32_0 = arith.constant 0 : i32
    %c0_i32_1 = arith.constant 0 : i32
    return %c0_i32, %c0_i32_0 : i32, i32
  }
  func.func @transform_4(%arg0: i32) -> (i32, i32) {
    %c0_i32 = arith.constant 0 : i32
    %c0_i32_0 = arith.constant 0 : i32
    %c0_i32_1 = arith.constant 0 : i32
    return %c0_i32, %c0_i32_0 : i32, i32
  }
  func.func @transform_5(%arg0: i32) -> (i32, i32) {
    %c0_i32 = arith.constant 0 : i32
    %c0_i32_0 = arith.constant 0 : i32
    %c0_i32_1 = arith.constant 0 : i32
    return %c0_i32, %c0_i32_0 : i32, i32
  }
  func.func @transform_6(%arg0: i32) -> (i32, i32) {
    %c0_i32 = arith.constant 0 : i32
    %c0_i32_0 = arith.constant 0 : i32
    return %c0_i32, %arg0 : i32, i32
  }
}

</mosaic_0001>

<bundles_post_ra>
// kernel: tpu_custom_call.1
= control target key start
LH: loop header
LB: loop body
LE: loop exit
PB: predicated region body
PF: predicated region fallthrough
CT: control target
= control target key end

     0   :  { %v863_v1 = vmov 0   ;;  %s1062_s0 = inlined_call_operand.vmem [shape: f32[1,128], index: 0, kind: input, shape index: {}]   ;;  %s1063_s1 = inlined_call_operand.vmem [shape: f32[16,1], index: 1, kind: input, shape index: {}]   ;;  %s1064_s2 = inlined_call_operand.vmem [shape: f32[32,16], index: 2, kind: input, shape index: {}]   ;;  %s1065_s3 = inlined_call_operand.vmem [shape: f32[32,16], index: 3, kind: input, shape index: {}]   ;;  %s1066_s4 = inlined_call_operand.vmem [shape: f32[32,1], index: 4, kind: input, shape index: {}]   ;;  %s1067_s5 = inlined_call_operand.vmem [shape: f32[32,1], index: 5, kind: input, shape index: {}]   ;;  %s1068_s6 = inlined_call_operand.hbm [shape: f32[32,128], index: 6, kind: output, shape index: {}]  }
   0x1   :  { %v25_v0 = vld [vmem:[%s1063_s1] sm:$0xff]  ;;  %829 = vset.pattern.permute.xlu0 %v863_v1  ;;  %830 = vset.pattern.permute.xlu1 %v863_v1  ;;  %v26_v2 = vld [vmem:[%s1063_s1 + $0x8] sm:$0xff] }
   0x2   :  { %29 = vperm.xlu0 %829, %v25_v0  }
   0x3   :  { %11 = vsyncpa [#allocation3], 0  ;;  %v664_v3 = vld [vmem:[%s1066_s4 + $0x10] sm:$0xff]  ;;  %v694_v4 = vld [vmem:[%s1067_s5] sm:$0xff]  ;;  %vm467_vm0 = vcmask 130048  }
   0x4   :  { %v696_v5 = vld [vmem:[%s1067_s5 + $0x10] sm:$0xff]  ;;  %v463_v6 = vld [vmem:[%s1065_s3] sm:$0xff]  ;;  %v663_v9 = vld [vmem:[%s1066_s4 + $0x8] sm:$0xff]  ;;  %v864_v34 = vmov 683565275  }
   0x5   :  { %v459_v7 = vld [vmem:[%s1064_s2] sm:$0xff]  ;;  %783 = vmatprep.mubr.msk.f32.mxu1 %vm467_vm0, %v463_v6  ;;  %v665_v10 = vld [vmem:[%s1066_s4 + $0x18] sm:$0xff]  ;;  %v695_v11 = vld [vmem:[%s1067_s5 + $0x8] sm:$0xff]  ;;  %v865_v38 = vmov 2475754826  }
   0x6   :  { %34 = vperm.xlu0 %829, %v26_v2   ;;  %793 = vmatprep.mubr.msk.f32.mxu0 %vm467_vm0, %v459_v7  ;;  %v662_v8 = vld [vmem:[%s1066_s4] sm:$0xff]  ;;  %v697_v12 = vld [vmem:[%s1067_s5 + $0x18] sm:$0xff]  ;;  %v866_v40 = vmov 2131351028   ;;  %v867_v42 = vmov 2102212464  }
   0x7   :  { %668 = vperm.xlu1 %830, %v662_v8   ;;  %v949_v13 = vld [vmem:[%s1062_s0] ss:$0 sm:$0xff]  ;;  %v868_v44 = vmov 920167782   ;;  %v869_v51 = vmov 1326507024  }
   0xa   :  { %678 = vperm.xlu0 %829, %v664_v3  }
   0xb   :  { %673 = vperm.xlu1 %830, %v663_v9  }
   0xe   :  { %700 = vperm.xlu0 %829, %v694_v4  }
   0xf   :  { %683 = vperm.xlu1 %830, %v665_v10  }
  0x12   :  { %710 = vperm.xlu0 %829, %v696_v5  }
  0x13   :  { %705 = vperm.xlu1 %830, %v695_v11  }
  0x17   :  { %715 = vperm.xlu1 %830, %v697_v12  }
  0x81   :  { %v30_v14 = vpop.permute.xlu0 %29 }
  0x82   :  { %v952_v15 = vmul.f32 %v949_v13, %v30_v14 }
  0x84   :  { %v45_v16 = vand.u32 2147483647, %v952_v15  ;;  %v48_v17 = vand.u32 2139095040, %v952_v15  ;;  %vm47_vm15 = vcmp.lt.s32.totalorder %v952_v15, 0 }
  0x85   :  { %v35_v18 = vpop.permute.xlu0 %34 }
  0x86   :  { %v49_v19 = vshrl.u32 %v48_v17, 23  ;;  %v957_v20 = vmul.f32 %v949_v13, %v35_v18  ;;  %v52_v21 = vand.u32 8388607, %v45_v16 }
  0x88   :  { %v743_v22 = vadd.s32 4294967169, %v49_v19  ;;  %v152_v23 = vand.u32 2139095040, %v957_v20  ;;  %v53_v25 = vor.u32 8388608, %v52_v21  ;;  %v149_v27 = vand.u32 2147483647, %v957_v20 }
  0x8a   :  { %v55_v24 = vadd.s32 1, %v743_v22  ;;  %v153_v26 = vshrl.u32 %v152_v23, 23  ;;  %v963_v32 = vshll.u32 %v53_v25, 8  ;;  %v156_v36 = vand.u32 8388607, %v149_v27 }
  0x8c   :  { %vm56_vm1 = vcmp.gt.s32.totalorder %v55_v24, 0  ;;  %v747_v29 = vadd.s32 4294967169, %v153_v26  ;;  %v157_v2 = vor.u32 8388608, %v156_v36 }
  0x8d   :  { %v57_v28 = vsel %vm56_vm1, %v55_v24, 0  ;;  %vm46_vm1 = vcmp.le.f32.partialorder %v45_v16, 0.7853982 }
  0x8e   :  { %v58_v30 = vshrl.u32 %v57_v28, 5  ;;  %v59_v31 = vand.u32 31, %v57_v28  ;;  %v159_v37 = vadd.s32 1, %v747_v29  ;;  %v197_v18 = vshll.u32 %v157_v2, 8 }
  0x90   :  { %v60_v33 = vsub.s32 32, %v59_v31  ;;  %v62_v35 = vshll.u32 %v864_v34, %v59_v31  ;;  %v65_v39 = vshll.u32 %v865_v38, %v59_v31  ;;  %v68_v41 = vshll.u32 %v866_v40, %v59_v31 }
  0x91   :  { %v71_v43 = vshll.u32 %v867_v42, %v59_v31  ;;  %v74_v45 = vshll.u32 %v868_v44, %v59_v31  ;;  %vm77_vm2 = vcmp.lt.s32.totalorder %v58_v30, 1  ;;  %vm79_vm3 = vcmp.lt.s32.totalorder %v58_v30, 3 }
  0x92   :  { %v63_v46 = vshrl.u32 %v865_v38, %v60_v33  ;;  %v66_v47 = vshrl.u32 %v866_v40, %v60_v33  ;;  %v69_v48 = vshrl.u32 %v867_v42, %v60_v33  ;;  %v61_v49 = vshrl.u32 %v864_v34, %v60_v33 }
  0x93   :  { %v72_v50 = vshrl.u32 %v868_v44, %v60_v33  ;;  %v75_v52 = vshrl.u32 %v869_v51, %v60_v33  ;;  %vm160_vm4 = vcmp.gt.s32.totalorder %v159_v37, 0  ;;  %vm80_vm5 = vcmp.lt.s32.totalorder %v58_v30, 4 }
  0x94   :  { %v64_v53 = vor.u32 %v63_v46, %v62_v35  ;;  %v67_v54 = vor.u32 %v66_v47, %v65_v39  ;;  %v70_v55 = vor.u32 %v69_v48, %v68_v41  ;;  %v161_v58 = vsel %vm160_vm4, %v159_v37, 0 }
  0x95   :  { %v73_v56 = vor.u32 %v72_v50, %v71_v43  ;;  %v76_v57 = vor.u32 %v75_v52, %v74_v45  ;;  %vm78_vm6 = vcmp.lt.s32.totalorder %v58_v30, 2  ;;  %v163_v5 = vand.u32 31, %v161_v58 }
  0x96   :  { %v81_v59 = vsel %vm77_vm2, %v61_v49, %v64_v53  ;;  %v82_v60 = vsel %vm80_vm5, %v70_v55, 2102212464  ;;  %v85_v61 = vsel %vm77_vm2, %v64_v53, %v67_v54  ;;  %v89_v62 = vsel %vm77_vm2, %v67_v54, %v70_v55 }
  0x97   :  { %v83_v63 = vsel %vm79_vm3, %v67_v54, %v82_v60  ;;  %v86_v0 = vsel %vm80_vm5, %v73_v56, 920167782  ;;  %v90_v1 = vsel %vm80_vm5, %v76_v57, 1326507024  ;;  %v162_v14 = vshrl.u32 %v161_v58, 5 }
  0x98   :  { %v87_v3 = vsel %vm79_vm3, %v70_v55, %v86_v0  ;;  %v91_v4 = vsel %vm79_vm3, %v73_v56, %v90_v1  ;;  %v84_v6 = vsel %vm78_vm6, %v81_v59, %v83_v63  ;;  %v164_v17 = vsub.s32 32, %v163_v5 }
  0x99   :  { %v88_v7 = vsel %vm78_vm6, %v85_v61, %v87_v3  ;;  %v92_v8 = vsel %vm78_vm6, %v89_v62, %v91_v4  ;;  %v100_v19 = vmul.u32 %v963_v32, %v84_v6  ;;  %v166_v21 = vshll.u32 %v864_v34, %v163_v5 }
  0x9a   :  { %v976_v9 = vmul.u32.u64.low %v963_v32, %v92_v8  ;;  %v977_v10 = vmul.u32.u64.high %v963_v32, %v92_v8, %v976_v9  ;;  %v980_v11 = vmul.u32.u64.low %v963_v32, %v88_v7  ;;  %v981_v12 = vmul.u32.u64.high %v963_v32, %v88_v7, %v980_v11 }
  0x9b   :  { %v169_v22 = vshll.u32 %v865_v38, %v163_v5  ;;  %v172_v23 = vshll.u32 %v866_v40, %v163_v5  ;;  %v167_v24 = vshrl.u32 %v865_v38, %v164_v17  ;;  %v170_v25 = vshrl.u32 %v866_v40, %v164_v17 }
  0x9c   :  { %v173_v26 = vshrl.u32 %v867_v42, %v164_v17  ;;  %v175_v28 = vshll.u32 %v867_v42, %v163_v5  ;;  %vm102_vm7 = vc.u32 %v977_v10, %v980_v11  ;;  %v103_v29 = vadd.s32 1, %v981_v12 }
  0x9d   :  { %v176_v30 = vshrl.u32 %v868_v44, %v164_v17  ;;  %v178_v31 = vshll.u32 %v868_v44, %v163_v5  ;;  %v168_v33 = vor.u32 %v167_v24, %v166_v21  ;;  %v171_v35 = vor.u32 %v170_v25, %v169_v22 }
  0x9e   :  { %v174_v36 = vor.u32 %v173_v26, %v172_v23  ;;  %v179_v37 = vshrl.u32 %v869_v51, %v164_v17  ;;  %v104_v32 = vsel %vm102_vm7, %v103_v29, %v981_v12  ;;  %vm181_vm8 = vcmp.lt.s32.totalorder %v162_v14, 1 }
  0x9f   :  { %v177_v39 = vor.u32 %v176_v30, %v175_v28  ;;  %vm184_vm9 = vcmp.lt.s32.totalorder %v162_v14, 4  ;;  %v105_v38 = vadd.s32 %v104_v32, %v100_v19  ;;  %vm183_vm10 = vcmp.lt.s32.totalorder %v162_v14, 3 }
  0xa0   :  { %v180_v40 = vor.u32 %v179_v37, %v178_v31  ;;  %v186_v41 = vsel %vm184_vm9, %v174_v36, 2102212464  ;;  %v165_v42 = vshrl.u32 %v864_v34, %v164_v17  ;;  %v189_v43 = vsel %vm181_vm8, %v168_v33, %v171_v35 }
  0xa1   :  { %v190_v45 = vsel %vm184_vm9, %v177_v39, 920167782  ;;  %v193_v46 = vsel %vm181_vm8, %v171_v35, %v174_v36  ;;  %v106_v47 = vadd.s32 536870912, %v105_v38  ;;  %vm182_vm11 = vcmp.lt.s32.totalorder %v162_v14, 2 }
  0xa2   :  { %v191_v44 = vsel %vm183_vm10, %v174_v36, %v190_v45  ;;  %v194_v48 = vsel %vm184_vm9, %v180_v40, 1326507024  ;;  %v185_v49 = vsel %vm181_vm8, %v165_v42, %v168_v33  ;;  %v187_v50 = vsel %vm183_vm10, %v171_v35, %v186_v41 }
  0xa3   :  { %v192_v51 = vsel %vm182_vm11, %v189_v43, %v191_v44  ;;  %v195_v52 = vsel %vm183_vm10, %v177_v39, %v194_v48  ;;  %v991_v53 = vshrl.u32 %v106_v47, 30  ;;  %v188_v59 = vsel %vm182_vm11, %v185_v49, %v187_v50 }
  0xa4   :  { %v196_v54 = vsel %vm182_vm11, %v193_v46, %v195_v52  ;;  %v993_v55 = vmul.u32.u64.low %v197_v18, %v192_v51  ;;  %v994_v56 = vmul.u32.u64.high %v197_v18, %v192_v51, %v993_v55  ;;  %v204_v62 = vmul.u32 %v197_v18, %v188_v59 }
  0xa5   :  { %v996_v57 = vmul.u32.u64.low %v197_v18, %v196_v54  ;;  %v997_v58 = vmul.u32.u64.high %v197_v18, %v196_v54, %v996_v57  ;;  %v108_v34 = vshll.u32 %v991_v53, 30  ;;  %v101_v12 = vadd.s32 %v980_v11, %v977_v10 }
  0xa6   :  { %v207_v61 = vadd.s32 1, %v994_v56  ;;  %v131_v46 = vsub.s32 4, %v991_v53  ;;  %vm151_vm2 = vcmp.lt.s32.totalorder %v957_v20, 0  ;;  %vm150_vm3 = vcmp.le.f32.partialorder %v149_v27, 0.7853982 }
  0xa7   :  { %v109_v60 = vsub.s32 %v105_v38, %v108_v34  ;;  %vm206_vm12 = vc.u32 %v997_v58, %v993_v55  ;;  %v205_v36 = vadd.s32 %v993_v55, %v997_v58 }
  0xa8   :  { %v208_v0 = vsel %vm206_vm12, %v207_v61, %v994_v56  ;;  %v132_v50 = vsel %vm47_vm15, %v131_v46, %v991_v53 }
  0xa9   :  { %v111_v63 = vsub.s32 0, %v109_v60  ;;  %v209_v1 = vadd.s32 %v208_v0, %v204_v62  ;;  %v134_v16 = vsel %vm46_vm1, 0, %v132_v50 }
  0xaa   :  { %v138_v57 = vadd.s32 3, %v134_v16 }
  0xab   :  { %v744_v2 = vmin.u32 %v111_v63, %v109_v60  ;;  %v210_v3 = vadd.s32 536870912, %v209_v1 }
  0xac   :  { %v139_v53 = vand.u32 3, %v138_v57 }
  0xad   :  { %v113_v4 = vclz %v744_v2  ;;  %v211_v5 = vshrl.u32 %v210_v3, 30 }
  0xae   :  { %vm141_vm6 = vcmp.eq.s32.totalorder %v139_v53, 0  ;;  %vm144_vm7 = vcmp.eq.s32.totalorder %v139_v53, 2  ;;  %vm140_vm10 = vcmp.lt.s32.totalorder %v139_v53, 2 }
  0xaf   :  { %v745_v6 = vadd.s32 4294967294, %v113_v4  ;;  %v212_v7 = vshll.u32 %v211_v5, 30  ;;  %v235_v49 = vsub.s32 4, %v211_v5 }
  0xb1   :  { %vm746_vm13 = vcmp.lt.s32.totalorder %v745_v6, 0  ;;  %v213_v9 = vsub.s32 %v209_v1, %v212_v7  ;;  %v236_v54 = vsel %vm151_vm2, %v235_v49, %v211_v5 }
  0xb2   :  { %v116_v8 = vsel %vm746_vm13, 0, %v745_v6  ;;  %v238_v56 = vsel %vm150_vm3, 0, %v236_v54 }
  0xb3   :  { %v117_v14 = vsub.s32 32, %v116_v8  ;;  %v121_v17 = vsub.s32 4294967266, %v116_v8  ;;  %v215_v18 = vsub.s32 0, %v213_v9  ;;  %v118_v19 = vshll.u32 %v109_v60, %v116_v8 }
  0xb4   :  { %v242_v59 = vadd.s32 3, %v238_v56  ;;  %v346_v60 = vand.u32 3, %v134_v16  ;;  %v449_v63 = vand.u32 3, %v238_v56 }
  0xb5   :  { %v119_v21 = vshrl.u32 %v101_v12, %v117_v14  ;;  %v122_v22 = vadd.s32 127, %v121_v17  ;;  %v748_v23 = vmin.u32 %v215_v18, %v213_v9 }
  0xb6   :  { %v243_v0 = vand.u32 3, %v242_v59  ;;  %vm348_vm4 = vcmp.eq.s32.totalorder %v346_v60, 0  ;;  %vm351_vm5 = vcmp.eq.s32.totalorder %v346_v60, 2  ;;  %vm347_vm8 = vcmp.lt.s32.totalorder %v346_v60, 2 }
  0xb7   :  { %v120_v24 = vor.u32 %v119_v21, %v118_v19  ;;  %v123_v25 = vshll.u32 %v122_v22, 23  ;;  %v217_v26 = vclz %v748_v23  ;;  %vm451_vm9 = vcmp.eq.s32.totalorder %v449_v63, 0 }
  0xb8   :  { %vm454_vm11 = vcmp.eq.s32.totalorder %v449_v63, 2  ;;  %vm245_vm12 = vcmp.eq.s32.totalorder %v243_v0, 0  ;;  %vm248_vm13 = vcmp.eq.s32.totalorder %v243_v0, 2 }
  0xb9   :  { %v124_v28 = vor.u32 4788187, %v123_v25  ;;  %v749_v29 = vadd.s32 4294967294, %v217_v26  ;;  %v127_v31 = vcvt.s32.f32 %v120_v24 }
  0xbb   :  { %v125_v30 = vand.u32 2147483647, %v124_v28  ;;  %vm750_vm14 = vcmp.lt.s32.totalorder %v749_v29, 0 }
  0xbc   :  { %v220_v35 = vsel %vm750_vm14, 0, %v749_v29  ;;  %vm450_vm14 = vcmp.lt.s32.totalorder %v449_v63, 2  ;;  %v464_v29 = vld [vmem:[%s1065_s3 + $0x8] sm:$0xff] }
  0xbd   :  { %v128_v33 = vmul.f32 %v127_v31, %v125_v30  ;;  %v221_v10 = vsub.s32 32, %v220_v35  ;;  %v225_v11 = vsub.s32 4294967266, %v220_v35  ;;  %v222_v32 = vshll.u32 %v213_v9, %v220_v35  ;;  %v461_v30 = vld [vmem:[%s1064_s2 + $0x10] sm:$0xff]  ;;  %v466_v31 = vld [vmem:[%s1065_s3 + $0x18] sm:$0xff]  ;;  %v669_v35 = vpop.permute.xlu1 %668 }
  0xbf   :  { %v129_v37 = vxor.u32 2147483648, %v128_v33  ;;  %v223_v39 = vshrl.u32 %v205_v36, %v221_v10  ;;  %v226_v38 = vadd.s32 127, %v225_v11  ;;  %v679_v11 = vpop.permute.xlu0 %678 }
  0xc1   :  { %v130_v40 = vsel %vm47_vm15, %v129_v37, %v128_v33  ;;  %v224_v41 = vor.u32 %v223_v39, %v222_v32  ;;  %v227_v42 = vshll.u32 %v226_v38, 23  ;;  %vm244_vm15 = vcmp.lt.s32.totalorder %v243_v0, 2  ;;  %v462_v33 = vld [vmem:[%s1064_s2 + $0x18] sm:$0xff]  ;;  %v674_v36 = vpop.permute.xlu1 %673 }
  0xc2   :  { %v133_v43 = vsel %vm46_vm1, %v952_v15, %v130_v40  ;;  %vm137_vm1 = vweird.f32 %v952_v15  ;;  %v460_v15 = vld [vmem:[%s1064_s2 + $0x8] sm:$0xff]  ;;  %v687_v39 = vmul.f32 %v949_v13, %v674_v36  ;;  %s870_s2 = smov [#allocation2]  }
  0xc3   :  { %v228_v45 = vor.u32 4788187, %v227_v42  ;;  %v231_v44 = vcvt.s32.f32 %v224_v41  ;;  %831 = vcosq.f32 %v133_v43  ;;  %v686_v42 = vmul.f32 %v949_v13, %v669_v35  ;;  %v701_v46 = vpop.permute.xlu0 %700 }
  0xc4   :  { %833 = vsinq.f32 %v133_v43 }
  0xc5   :  { %v229_v47 = vand.u32 2147483647, %v228_v45  ;;  %v684_v10 = vpop.permute.xlu1 %683 }
  0xc6   :  { %v689_v50 = vmul.f32 %v949_v13, %v684_v10 }
  0xc7   :  { %v232_v48 = vmul.f32 %v231_v44, %v229_v47  ;;  %v711_v60 = vpop.permute.xlu0 %710 }
  0xc9   :  { %v233_v51 = vxor.u32 2147483648, %v232_v48  ;;  %v706_v43 = vpop.permute.xlu1 %705 }
  0xcb   :  { %v234_v52 = vsel %vm151_vm2, %v233_v51, %v232_v48  ;;  %vm241_vm2 = vweird.f32 %v957_v20 }
  0xcc   :  { %v237_v55 = vsel %vm150_vm3, %v957_v20, %v234_v52  ;;  %v465_v20 = vld [vmem:[%s1065_s3 + $0x10] sm:$0xff]  ;;  %s731_s3 = sshll.u32 %s870_s2, 4  ;;  %s732_s3 = int_to_ptr.vmem [resolvable:$true] %s731_s3 }
  0xcd   :  { %835 = vcosq.f32 %v237_v55  ;;  %v832_v58 = vpop.eup %831  ;;  %s839_s7 = scalar_lea.vmem %s732_s3, 512  ;;  %p844_p1 = scmp.lt.s32.totalorder %s732_s3, %s732_s3 }
  0xce   :  { %837 = vsinq.f32 %v237_v55  ;;  %v834_v34 = vpop.eup %833  ;;  %v145_v62 = vxor.u32 2147483648, %v832_v58  ;;  %v688_v55 = vmul.f32 %v949_v13, %v679_v11  ;;  %p840_p0 = scmp.ne.s32.totalorder %s732_s3, %s839_s7  ;;  %p845_p2 = scmp.lt.s32.totalorder %s839_s7, %s839_s7 }
  0xcf   :  { %v142_v61 = vxor.u32 2147483648, %v834_v34 }
  0xd0   :  { %v353_v2 = vsel %vm351_vm5, %v145_v62, %v834_v34  ;;  %v146_v4 = vsel %vm144_vm7, %v145_v62, %v834_v34  ;;  %v716_v34 = vpop.permute.xlu1 %715  ;;  %p846_p3 = por %p845_p2, %p844_p1 }
  0xd1   :  { %v350_v1 = vsel %vm348_vm4, %v832_v58, %v142_v61  ;;  %v143_v3 = vsel %vm141_vm6, %v832_v58, %v142_v61 }
  0xd2   :  { %v354_v8 = vsel %vm347_vm8, %v350_v1, %v353_v2  ;;  %v147_v12 = vsel %vm140_vm10, %v143_v3, %v146_v4  ;;  %p847_p4 = pnand %p846_p3, %p840_p0 }
  0xd3   :  { %v355_v22 = vsel %vm137_vm1, nan, %v354_v8  ;;  %v148_v24 = vsel %vm137_vm1, nan, %v147_v12 }
  0xd7   :  { %v836_v27 = vpop.eup %835 }
  0xd8   :  { %v838_v5 = vpop.eup %837  ;;  %v249_v6 = vxor.u32 2147483648, %v836_v27 }
  0xd9   :  { %v246_v7 = vxor.u32 2147483648, %v838_v5 }
  0xda   :  { %v456_v9 = vsel %vm454_vm11, %v249_v6, %v838_v5  ;;  %v250_v14 = vsel %vm248_vm13, %v249_v6, %v838_v5 }
  0xdb   :  { %v453_v17 = vsel %vm451_vm9, %v836_v27, %v246_v7  ;;  %v247_v18 = vsel %vm245_vm12, %v836_v27, %v246_v7 }
  0xdc   :  { %v457_v19 = vsel %vm450_vm14, %v453_v17, %v456_v9  ;;  %v251_v21 = vsel %vm244_vm15, %v247_v18, %v250_v14 }
  0xdd   :  { %v458_v23 = vsel %vm241_vm2, nan, %v457_v19  ;;  %v252_v25 = vsel %vm241_vm2, nan, %v251_v21 }
  0xde   :  { %v799_v26 = vpack.c.bf16 %v458_v23, %v355_v22  ;;  %v803_v28 = vpack.c.bf16 %v252_v25, %v148_v24 }
  0xe0   :  { %800 = vmatprep.subr.bf16.mxu1 %v799_v26  ;;  %804 = vmatprep.subr.bf16.mxu0 %v803_v28 }
  0xe1   :  { %802 = vmatpush3.bf16.msra.mxu1 %v799_v26  ;;  %806 = vmatpush3.bf16.msra.mxu0 %v803_v28 }
  0xe4   :  { %784 = vmatmul.mubr.msk.f32.vlgmr.msra.gmra.mrb[0].mxu1 %vm467_vm0, %v464_v29  ;;  %794 = vmatmul.mubr.msk.f32.vlgmr.msra.gmra.mrb[0].mxu0 %vm467_vm0, %v460_v15 }
  0xe5   :  { %786 = vmatprep.mubr.msk.f32.mxu1 %vm467_vm0, %v465_v20  ;;  %796 = vmatprep.mubr.msk.f32.mxu0 %vm467_vm0, %v461_v30 }
  0xe8   :  { %787 = vmatmul.mubr.msk.f32.gmra.mrb[2].mxu1 %vm467_vm0, %v466_v31  ;;  %797 = vmatmul.mubr.msk.f32.gmra.mrb[2].mxu0 %vm467_vm0, %v462_v33 }
 0x1b7   :  { %v785_v37 = vpop.f32.mrb[0].mxu1  ;;  %v795_v32 = vpop.f32.mrb[0].mxu0 }
 0x1b8   :  { %v649_v38 = vadd.f32 %v795_v32, %v785_v37  ;;  %v546_v40 = vpop.f32.mrb[1].mxu1  ;;  %v643_v41 = vpop.f32.mrb[1].mxu0 }
 0x1b9   :  { %v644_v45 = vadd.f32 %v643_v41, %v546_v40 }
 0x1ba   :  { %v691_v47 = vadd.f32 %v687_v39, %v649_v38 }
 0x1bb   :  { %v690_v44 = vadd.f32 %v686_v42, %v644_v45  ;;  %v788_v48 = vpop.f32.mrb[2].mxu1  ;;  %v798_v49 = vpop.f32.mrb[2].mxu0 }
 0x1bc   :  { %v719_v51 = vadd.f32 %v706_v43, %v691_v47  ;;  %v659_v52 = vadd.f32 %v798_v49, %v788_v48  ;;  %v556_v16 = vpop.f32.mrb[3].mxu1  ;;  %v653_v54 = vpop.f32.mrb[3].mxu0 }
 0x1bd   :  { %v718_v56 = vadd.f32 %v701_v46, %v690_v44  ;;  %v654_v57 = vadd.f32 %v653_v54, %v556_v16 }
 0x1be   :  { %723 = vst [vmem:[#allocation2 + $0x8] sm:$0xff] %v719_v51  ;;  %v693_v58 = vadd.f32 %v689_v50, %v659_v52 }
 0x1bf   :  { %722 = vst [vmem:[#allocation2] sm:$0xff] %v718_v56  ;;  %v692_v59 = vadd.f32 %v688_v55, %v654_v57 }
 0x1c0   :  { %v721_v53 = vadd.f32 %v716_v34, %v693_v58 }
 0x1c1   :  { %v720_v61 = vadd.f32 %v711_v60, %v692_v59 }
 0x1c2   :  { %725 = vst [vmem:[#allocation2 + $0x18] sm:$0xff] %v721_v53 }
 0x1c3   :  { %724 = vst [vmem:[#allocation2 + $0x10] sm:$0xff] %v720_v61 }
 0x1c4   :  { %850 = shalt.err (!%p847_p4)
}
 0x1c5   :  { %s851_s9 = scalar_lea.hbm %s1068_s6, 512 }
 0x1c6   :  { %p852_p5 = scmp.ne.s32.totalorder %s1068_s6, %s851_s9  ;;  %p855_p6 = scmp.lt.u32.totalorder %s851_s9, %s1068_s6 }
 0x1c8   :  { %p857_p7 = pnand %p855_p6, %p852_p5 }
 0x1ca   :  { %860 = shalt.err (!%p857_p7)
}
 0x1cb   :  { %s871_s14 = smov 128   ;;  %s872_s15 = smov 8  }
 0x1cc   :  { %737 = dma.vmem_to_hbm [thread:$0]  %s732_s3, 512, %s1068_s6, [#allocation3], %s871_s14, %s871_s14, %s872_s15  }
 0x1cd   :  { %861 = dma.done.wait [#allocation3], 512  }
 0x1ce   :  { %862 = vsyncadd [#allocation3], 4294966784 }
 0x1cf   :  { %741 = vsyncpa [#allocation3], 1 }

</bundles_post_ra>
